<compile_context>
chip_gen: v7x
topology: tpu7x:2x2x1
jax: 0.10.0
libtpu: 0.0.40
codegen_flags: <defaults>
</compile_context>

<pallas_src>
import jax
import jax.numpy as jnp
from jax.experimental import pallas as pl
from jax.experimental.pallas import tpu as pltpu

K = 16          # Synthesizer feature dim
LANE = 128      # TPU vreg lane width


def _synth_kernel(x_ref, y_ref, w_ref, b_ref, o_ref):
    # x_ref, y_ref : (K, tile_n) VMEM blocks of the flattened inputs
    # w_ref        : (K, 1)  VMEM  f32 linear weight column (W[0, :].T)
    # b_ref        : (1,)    SMEM  f32 linear bias
    # o_ref        : (1, tile_n) VMEM output block
    prod = x_ref[...].astype(jnp.float32) * y_ref[...].astype(jnp.float32)
    weighted = prod * w_ref[...]                       # lane-broadcast of (K,1)
    acc = jnp.sum(weighted, axis=0, keepdims=True)     # cross-sublane reduce
    o_ref[...] = (acc + b_ref[0]).astype(o_ref.dtype)  # bias only on (1,tile_n)


def synthesizer(x, y, weight, bias=None, *,
                max_tile_rows=512,
                vmem_budget_bytes=40 * 1024 * 1024):
    """x, y: (K, B, S); weight: (1, K); bias: (1,) or None. Returns (B, S)."""
    Kdim, B, S = x.shape
    assert Kdim == K and y.shape == x.shape
    N = B * S
    out_dtype = x.dtype

    # Flatten (K, B, S) -> (K, N): free row-major reshape, no padding/copies.
    xf = x.reshape(Kdim, N)
    yf = y.reshape(Kdim, N)

    w_col = weight.reshape(Kdim, 1).astype(jnp.float32)
    if bias is None:
        b_vec = jnp.zeros((1,), jnp.float32)
    else:
        b_vec = bias.reshape(1).astype(jnp.float32)

    in_itemsize = jnp.dtype(x.dtype).itemsize
    out_itemsize = jnp.dtype(out_dtype).itemsize

    # ---- tile selection: big lane-dense blocks under a VMEM budget ----------
    # Per 128-lane "row": double-buffered inputs + double-buffered output
    # + generous allowance for in-kernel f32 temporaries (prod/weighted/casts).
    io_per_row = 2 * 2 * Kdim * LANE * in_itemsize + 2 * LANE * out_itemsize
    tmp_per_row = 4 * Kdim * LANE * 4
    budget_rows = max(int(vmem_budget_bytes) // (io_per_row + tmp_per_row), 1)
    rows_needed = pl.cdiv(N, LANE)
    tile_rows = max(min(max_tile_rows, budget_rows, rows_needed), 1)
    tile_n = tile_rows * LANE                      # multiple of 128 by design
    grid = (pl.cdiv(N, tile_n),)                   # partial tail block is fine

    # Raise the scoped-VMEM limit so the larger tiles actually compile.
    block_in = Kdim * tile_n * in_itemsize
    block_out = tile_n * out_itemsize
    temps = 4 * Kdim * tile_n * 4
    vmem_limit = int((2 * 2 * block_in + 2 * block_out + temps) * 1.2) + (2 << 20)
    vmem_limit = min(max(vmem_limit, 32 * 1024 * 1024), 56 * 1024 * 1024)

    cost = pl.CostEstimate(
        flops=3 * Kdim * N,
        transcendentals=0,
        bytes_accessed=2 * Kdim * N * in_itemsize + N * out_itemsize,
    )

    out2d = pl.pallas_call(
        _synth_kernel,
        out_shape=jax.ShapeDtypeStruct((1, N), out_dtype),
        grid=grid,
        in_specs=[
            pl.BlockSpec((Kdim, tile_n), lambda i: (0, i)),
            pl.BlockSpec((Kdim, tile_n), lambda i: (0, i)),
            pl.BlockSpec((Kdim, 1), lambda i: (0, 0)),
            pl.BlockSpec(memory_space=pltpu.MemorySpace.SMEM),
        ],
        out_specs=pl.BlockSpec((1, tile_n), lambda i: (0, i)),
        compiler_params=pltpu.CompilerParams(
            dimension_semantics=("parallel",),
            vmem_limit_bytes=vmem_limit,
        ),
        cost_estimate=cost,
    )(xf, yf, w_col, b_vec)

    return out2d.reshape(B, S)


if __name__ == "__main__":
    # Small shapes consistent with the module: K=16 leading dim, batch=2.
    B, S = 2, 1024   # N = 2048 lanes -> single large block, exercises the kernel
    key = jax.random.PRNGKey(0)
    kx, ky, kw, kb = jax.random.split(key, 4)

    x = jax.random.normal(kx, (K, B, S), dtype=jnp.float32)
    y = jax.random.normal(ky, (K, B, S), dtype=jnp.float32)

    # Parameter init matching nn.Linear's uniform(-1/sqrt(K), 1/sqrt(K)) range.
    bound = 1.0 / (K ** 0.5)
    weight = jax.random.uniform(kw, (1, K), minval=-bound, maxval=bound,
                                dtype=jnp.float32)
    bias = jax.random.uniform(kb, (1,), minval=-bound, maxval=bound,
                              dtype=jnp.float32)

    out = synthesizer(x, y, weight, bias)
    out = jax.block_until_ready(out)

    # Pure-JAX reference of the PyTorch forward.
    prod = x * y                                        # (K, B, S)
    ref = jnp.einsum("kbs,k->bs", prod, weight[0]) + bias[0]

    assert out.shape == (B, S), out.shape
    assert jnp.allclose(out, ref, atol=1e-5, rtol=1e-5), (
        float(jnp.max(jnp.abs(out - ref))))
    print("KERNEL_OK")
</pallas_src>

<mosaic_0001>
module attributes {stable_mosaic.version = 11 : i64} {
  func.func @_synth_kernel(%arg0: i32, %arg1: memref<16x2048xf32, #tpu.memory_space<vmem>>, %arg2: memref<16x2048xf32, #tpu.memory_space<vmem>>, %arg3: memref<16x1xf32, #tpu.memory_space<vmem>>, %arg4: memref<1xf32, #tpu.memory_space<smem>>, %arg5: memref<1x2048xf32, #tpu.memory_space<vmem>>) attributes {dimension_semantics = [#tpu.dimension_semantics<parallel>], iteration_bounds = array<i64: 1>, scalar_prefetch = 0 : i64, scratch_operands = 0 : i64, tpu.core_type = #tpu.core_type<tc>, window_params = [{transform_indices = @transform_0, window_bounds = array<i64: 16, 2048>}, {transform_indices = @transform_1, window_bounds = array<i64: 16, 2048>}, {pipeline_mode = #tpu.pipeline_mode<synchronous>, transform_indices = @transform_2, window_bounds = array<i64: 16, 1>}, {transform_indices = @transform_3, window_bounds = array<i64: 1>}, {transform_indices = @transform_4, window_bounds = array<i64: 1, 2048>}]} {
    %c0 = arith.constant 0 : index
    %c0_0 = arith.constant 0 : index
    %0 = vector.load %arg1[%c0, %c0_0] : memref<16x2048xf32, #tpu.memory_space<vmem>>, vector<16x2048xf32>
    %c0_1 = arith.constant 0 : index
    %c0_2 = arith.constant 0 : index
    %1 = vector.load %arg2[%c0_1, %c0_2] : memref<16x2048xf32, #tpu.memory_space<vmem>>, vector<16x2048xf32>
    %2 = arith.mulf %0, %1 : vector<16x2048xf32>
    %c0_3 = arith.constant 0 : index
    %c0_4 = arith.constant 0 : index
    %3 = vector.load %arg3[%c0_3, %c0_4] : memref<16x1xf32, #tpu.memory_space<vmem>>, vector<16x1xf32>
    %4 = vector.broadcast %3 : vector<16x1xf32> to vector<16x2048xf32>
    %5 = arith.mulf %2, %4 : vector<16x2048xf32>
    %cst = arith.constant dense<0.000000e+00> : vector<2048xf32>
    %6 = vector.multi_reduction <add>, %5, %cst [0] : vector<16x2048xf32> to vector<2048xf32>
    %7 = vector.shape_cast %6 : vector<2048xf32> to vector<1x2048xf32>
    %c0_5 = arith.constant 0 : index
    %8 = memref.load %arg4[%c0_5] : memref<1xf32, #tpu.memory_space<smem>>
    %9 = vector.broadcast %8 : f32 to vector<1x2048xf32>
    %10 = arith.addf %7, %9 : vector<1x2048xf32>
    %c0_6 = arith.constant 0 : index
    %c0_7 = arith.constant 0 : index
    %11 = vector.load %arg5[%c0_6, %c0_7] : memref<1x2048xf32, #tpu.memory_space<vmem>>, vector<1x2048xf32>
    tpu.vector_store %arg5[%c0_6, %c0_7], %10 {strides = array<i32>} : memref<1x2048xf32, #tpu.memory_space<vmem>>, vector<1x2048xf32>,
    return
  }
  func.func @transform_0(%arg0: i32) -> (i32, i32) {
    %c0_i32 = arith.constant 0 : i32
    %c0_i32_0 = arith.constant 0 : i32
    return %c0_i32, %arg0 : i32, i32
  }
  func.func @transform_1(%arg0: i32) -> (i32, i32) {
    %c0_i32 = arith.constant 0 : i32
    %c0_i32_0 = arith.constant 0 : i32
    return %c0_i32, %arg0 : i32, i32
  }
  func.func @transform_2(%arg0: i32) -> (i32, i32) {
    %c0_i32 = arith.constant 0 : i32
    %c0_i32_0 = arith.constant 0 : i32
    %c0_i32_1 = arith.constant 0 : i32
    return %c0_i32, %c0_i32_0 : i32, i32
  }
  func.func @transform_3(%arg0: i32) -> i32 {
    %c0_i32 = arith.constant 0 : i32
    %c0_i32_0 = arith.constant 0 : i32
    return %c0_i32 : i32
  }
  func.func @transform_4(%arg0: i32) -> (i32, i32) {
    %c0_i32 = arith.constant 0 : i32
    %c0_i32_0 = arith.constant 0 : i32
    return %c0_i32, %arg0 : i32, i32
  }
}

</mosaic_0001>

<bundles_post_ra>
// kernel: tpu_custom_call.1
= control target key start
LH: loop header
LB: loop body
LE: loop exit
PB: predicated region body
PF: predicated region fallthrough
CT: control target
= control target key end

     0   :  { %10 = vsyncpa [#allocation4], 0  ;;  %s724_s0 = inlined_call_operand.hbm [shape: f32[16,2048], index: 0, kind: input, shape index: {}]   ;;  %s725_s1 = inlined_call_operand.hbm [shape: f32[16,2048], index: 1, kind: input, shape index: {}]   ;;  %s726_s2 = inlined_call_operand.vmem [shape: f32[16,1], index: 2, kind: input, shape index: {}]   ;;  %s727_s3 = inlined_call_operand.<no memory space> [shape: f32[1], index: 3, kind: input, shape index: {}]   ;;  %s728_s4 = inlined_call_operand.hbm [shape: f32[1,2048], index: 4, kind: output, shape index: {}]  }
   0x1   :  { %11 = vsyncpa [#allocation7], 0 }
   0x2   :  { %12 = vsyncpa [#allocation5], 0  ;;  %s531_s15 = smov [#allocation3]   ;;  %s459_s19 = scalar_lea.hbm %s724_s0, 4096 }
   0x3   :  { %s18_s16 = sshll.u32 %s531_s15, 4  ;;  %p460_p0 = scmp.ne.s32.totalorder %s724_s0, %s459_s19  ;;  %s19_s16 = int_to_ptr.vmem [resolvable:$true] %s18_s16 }
   0x4   :  { %p463_p1 = scmp.lt.u32.totalorder %s459_s19, %s724_s0 }
   0x6   :  { %p465_p2 = pnand %p463_p1, %p460_p0 }
   0x8   :  { %468 = shalt.err (!%p465_p2)
}
   0x9   :  { %s469_s24 = scalar_lea.vmem %s19_s16, 4096  ;;  %p474_p4 = scmp.lt.s32.totalorder %s19_s16, %s19_s16 }
   0xa   :  { %p470_p3 = scmp.ne.s32.totalorder %s19_s16, %s469_s24  ;;  %p475_p5 = scmp.lt.s32.totalorder %s469_s24, %s469_s24 }
   0xc   :  { %p476_p6 = por %p475_p5, %p474_p4 }
   0xe   :  { %p477_p7 = pnand %p476_p6, %p470_p3 }
  0x10   :  { %480 = shalt.err (!%p477_p7)
}
  0x11   :  { %s532_s25 = smov 2048   ;;  %s533_s26 = smov 128  }
  0x12   :  { %24 = dma.hbm_to_vmem [thread:$0]  %s724_s0, 4096, %s19_s16, [#allocation4], %s532_s25, %s532_s25, %s533_s26  }
  0x13   :  { %s534_s29 = smov [#allocation6]   ;;  %s481_s7 = scalar_lea.hbm %s725_s1, 4096 }
  0x14   :  { %s30_s30 = sshll.u32 %s534_s29, 4  ;;  %p482_p8 = scmp.ne.s32.totalorder %s725_s1, %s481_s7  ;;  %s31_s30 = int_to_ptr.vmem [resolvable:$true] %s30_s30 }
  0x15   :  { %p485_p9 = scmp.lt.u32.totalorder %s481_s7, %s725_s1 }
  0x17   :  { %p487_p10 = pnand %p485_p9, %p482_p8 }
  0x19   :  { %490 = shalt.err (!%p487_p10)
}
  0x1a   :  { %s491_s12 = scalar_lea.vmem %s31_s30, 4096  ;;  %p496_p12 = scmp.lt.s32.totalorder %s31_s30, %s31_s30 }
  0x1b   :  { %p492_p11 = scmp.ne.s32.totalorder %s31_s30, %s491_s12  ;;  %p497_p13 = scmp.lt.s32.totalorder %s491_s12, %s491_s12 }
  0x1d   :  { %p498_p0 = por %p497_p13, %p496_p12 }
  0x1f   :  { %p499_p1 = pnand %p498_p0, %p492_p11 }
  0x21   :  { %502 = shalt.err (!%p499_p1)
}
  0x22   :  { %36 = dma.hbm_to_vmem [thread:$0]  %s725_s1, 4096, %s31_s30, [#allocation7], %s532_s25, %s532_s25, %s533_s26  }
  0x23   :  { %525 = dma.done.wait [#allocation4], 4096  }
  0x24   :  { %526 = vsyncadd [#allocation4], 4294963200 }
  0x25   :  { %527 = dma.done.wait [#allocation7], 4096  }
  0x26   :  { %528 = vsyncadd [#allocation7], 4294963200  ;;  %v535_v0 = vmov 0   ;;  %v143_v1 = vld [vmem:[%s726_s2] sm:$0xff]  ;;  %v144_v2 = vld [vmem:[%s726_s2 + $0x8] sm:$0xff]  ;;  %v340_v49 = vlaneseq }
  0x27   :  { %458 = vset.pattern.permute.xlu0 %v535_v0  ;;  %v47_v3 = vld [vmem:[#allocation3] sm:$0xff]  ;;  %v48_v4 = vld [vmem:[#allocation3 + $0x8] sm:$0xff]  ;;  %v49_v5 = vld [vmem:[#allocation3 + $0x10] sm:$0xff]  ;;  %v536_v47 = vmov 1966171168  }
  0x28   :  { %147 = vperm.xlu0 %458, %v143_v1   ;;  %v50_v6 = vld [vmem:[#allocation3 + $0x18] sm:$0xff]  ;;  %v79_v7 = vld [vmem:[#allocation6] sm:$0xff]  ;;  %v80_v8 = vld [vmem:[#allocation6 + $0x8] sm:$0xff]  ;;  %v338_v48 = vunpack.c.l.s4 %v536_v47 }
  0x29   :  { %v81_v9 = vld [vmem:[#allocation6 + $0x10] sm:$0xff]  ;;  %v51_v10 = vld [vmem:[#allocation3 + $0x20] sm:$0xff]  ;;  %v52_v11 = vld [vmem:[#allocation3 + $0x28] sm:$0xff]  ;;  %v593_v36 = vmul.f32 %v79_v7, %v47_v3  ;;  %v595_v37 = vmul.f32 %v80_v8, %v48_v4 }
  0x2a   :  { %v53_v12 = vld [vmem:[#allocation3 + $0x30] sm:$0xff]  ;;  %v54_v13 = vld [vmem:[#allocation3 + $0x38] sm:$0xff]  ;;  %v83_v15 = vld [vmem:[#allocation6 + $0x20] sm:$0xff]  ;;  %v597_v45 = vmul.f32 %v81_v9, %v49_v5 }
  0x2b   :  { %v82_v14 = vld [vmem:[#allocation6 + $0x18] sm:$0xff]  ;;  %v84_v16 = vld [vmem:[#allocation6 + $0x28] sm:$0xff]  ;;  %v55_v17 = vld [vmem:[#allocation3 + $0x40] sm:$0xff]  ;;  %729 = vst [vmem:[#allocation12_spill] sm:$0xff] %v593_v36  ;;  %v115_v57 = vmul.f32 %v83_v15, %v51_v10 }
  0x2c   :  { %152 = vperm.xlu0 %458, %v144_v2   ;;  %v56_v18 = vld [vmem:[#allocation3 + $0x48] sm:$0xff]  ;;  %v57_v19 = vld [vmem:[#allocation3 + $0x50] sm:$0xff]  ;;  %v58_v20 = vld [vmem:[#allocation3 + $0x58] sm:$0xff]  ;;  %730 = vst [vmem:[#allocation13_spill] sm:$0xff] %v595_v37  ;;  %v599_v46 = vmul.f32 %v82_v14, %v50_v6  ;;  %v116_v58 = vmul.f32 %v84_v16, %v52_v11  ;;  %v341_v37 = vshrl.u32 %v340_v49, 7 }
  0x2d   :  { %v85_v21 = vld [vmem:[#allocation6 + $0x30] sm:$0xff]  ;;  %v86_v22 = vld [vmem:[#allocation6 + $0x38] sm:$0xff]  ;;  %v87_v23 = vld [vmem:[#allocation6 + $0x40] sm:$0xff]  ;;  %731 = vst [vmem:[#allocation14_spill] sm:$0xff] %v597_v45  ;;  %v339_v45 = vunpack.c.0.s8 %v338_v48 }
  0x2e   :  { %v59_v24 = vld [vmem:[#allocation3 + $0x60] sm:$0xff]  ;;  %v60_v25 = vld [vmem:[#allocation3 + $0x68] sm:$0xff]  ;;  %v61_v26 = vld [vmem:[#allocation3 + $0x70] sm:$0xff]  ;;  %732 = vst [vmem:[#allocation15_spill] sm:$0xff] %v599_v46  ;;  %v117_v59 = vmul.f32 %v85_v21, %v53_v12  ;;  %v118_v60 = vmul.f32 %v86_v22, %v54_v13  ;;  %v119_v4 = vmul.f32 %v87_v23, %v55_v17 }
  0x2f   :  { %v62_v27 = vld [vmem:[#allocation3 + $0x78] sm:$0xff]  ;;  %v88_v28 = vld [vmem:[#allocation6 + $0x48] sm:$0xff]  ;;  %v89_v29 = vld [vmem:[#allocation6 + $0x50] sm:$0xff] }
  0x30   :  { %v90_v30 = vld [vmem:[#allocation6 + $0x58] sm:$0xff]  ;;  %v63_v31 = vld [vmem:[#allocation3 + $0x80] sm:$0xff]  ;;  %v64_v32 = vld [vmem:[#allocation3 + $0x88] sm:$0xff]  ;;  %v120_v5 = vmul.f32 %v88_v28, %v56_v18  ;;  %v121_v6 = vmul.f32 %v89_v29, %v57_v19 }
  0x31   :  { %v91_v33 = vld [vmem:[#allocation6 + $0x60] sm:$0xff]  ;;  %v92_v34 = vld [vmem:[#allocation6 + $0x68] sm:$0xff]  ;;  %v93_v35 = vld [vmem:[#allocation6 + $0x70] sm:$0xff]  ;;  %v122_v7 = vmul.f32 %v90_v30, %v58_v20 }
  0x32   :  { %v65_v38 = vld [vmem:[#allocation3 + $0x90] sm:$0xff]  ;;  %v66_v39 = vld [vmem:[#allocation3 + $0x98] sm:$0xff]  ;;  %v67_v40 = vld [vmem:[#allocation3 + $0xa0] sm:$0xff]  ;;  %v123_v46 = vmul.f32 %v91_v33, %v59_v24  ;;  %v124_v10 = vmul.f32 %v92_v34, %v60_v25  ;;  %v125_v11 = vmul.f32 %v93_v35, %v61_v26 }
  0x33   :  { %v68_v41 = vld [vmem:[#allocation3 + $0xa8] sm:$0xff]  ;;  %v94_v42 = vld [vmem:[#allocation6 + $0x78] sm:$0xff]  ;;  %v95_v43 = vld [vmem:[#allocation6 + $0x80] sm:$0xff] }
  0x34   :  { %v96_v44 = vld [vmem:[#allocation6 + $0x88] sm:$0xff]  ;;  %v69_v50 = vld [vmem:[#allocation3 + $0xb0] sm:$0xff]  ;;  %v70_v51 = vld [vmem:[#allocation3 + $0xb8] sm:$0xff]  ;;  %v126_v12 = vmul.f32 %v94_v42, %v62_v27  ;;  %v127_v21 = vmul.f32 %v95_v43, %v63_v31  ;;  %v604_v42 = vstv %s727_s3  ;;  %s537_s3 = smov [#allocation8]  }
  0x35   :  { %v71_v52 = vld [vmem:[#allocation3 + $0xc0] sm:$0xff]  ;;  %v72_v53 = vld [vmem:[#allocation3 + $0xc8] sm:$0xff]  ;;  %v97_v54 = vld [vmem:[#allocation6 + $0x90] sm:$0xff]  ;;  %v128_v22 = vmul.f32 %v96_v44, %v64_v32  ;;  %s441_s18 = sshll.u32 %s537_s3, 4  ;;  %s442_s18 = int_to_ptr.vmem [resolvable:$true] %s441_s18 }
  0x36   :  { %v98_v55 = vld [vmem:[#allocation6 + $0x98] sm:$0xff]  ;;  %v99_v56 = vld [vmem:[#allocation6 + $0xa0] sm:$0xff]  ;;  %v73_v61 = vld [vmem:[#allocation3 + $0xd0] sm:$0xff]  ;;  %v129_v19 = vmul.f32 %v97_v54, %v65_v38  ;;  %v606_v38 = vsub.s32 %v339_v45, %v341_v37  ;;  %s503_s19 = scalar_lea.vmem %s442_s18, 256  ;;  %p508_p3 = scmp.lt.s32.totalorder %s442_s18, %s442_s18 }
  0x37   :  { %v74_v62 = vld [vmem:[#allocation3 + $0xd8] sm:$0xff]  ;;  %v75_v63 = vld [vmem:[#allocation3 + $0xe0] sm:$0xff]  ;;  %v76_v0 = vld [vmem:[#allocation3 + $0xe8] sm:$0xff]  ;;  %v130_v20 = vmul.f32 %v98_v55, %v66_v39  ;;  %v131_v23 = vmul.f32 %v99_v56, %v67_v40  ;;  %p504_p2 = scmp.ne.s32.totalorder %s442_s18, %s503_s19  ;;  %p509_p4 = scmp.lt.s32.totalorder %s503_s19, %s503_s19 }
  0x38   :  { %v100_v1 = vld [vmem:[#allocation6 + $0xa8] sm:$0xff]  ;;  %v101_v2 = vld [vmem:[#allocation6 + $0xb0] sm:$0xff]  ;;  %v102_v3 = vld [vmem:[#allocation6 + $0xb8] sm:$0xff] }
  0x39   :  { %v77_v8 = vld [vmem:[#allocation3 + $0xf0] sm:$0xff]  ;;  %v103_v9 = vld [vmem:[#allocation6 + $0xc0] sm:$0xff]  ;;  %v104_v14 = vld [vmem:[#allocation6 + $0xc8] sm:$0xff]  ;;  %v132_v28 = vmul.f32 %v100_v1, %v68_v41  ;;  %v133_v29 = vmul.f32 %v101_v2, %v69_v50  ;;  %v134_v30 = vmul.f32 %v102_v3, %v70_v51  ;;  %p510_p5 = por %p509_p4, %p508_p3 }
  0x3a   :  { %v105_v47 = vld [vmem:[#allocation6 + $0xd0] sm:$0xff]  ;;  %v106_v13 = vld [vmem:[#allocation6 + $0xd8] sm:$0xff]  ;;  %v107_v15 = vld [vmem:[#allocation6 + $0xe0] sm:$0xff]  ;;  %v135_v24 = vmul.f32 %v103_v9, %v71_v52  ;;  %v136_v25 = vmul.f32 %v104_v14, %v72_v53 }
  0x3b   :  { %v108_v16 = vld [vmem:[#allocation6 + $0xe8] sm:$0xff]  ;;  %v78_v36 = vld [vmem:[#allocation3 + $0xf8] sm:$0xff]  ;;  %v109_v17 = vld [vmem:[#allocation6 + $0xf0] sm:$0xff]  ;;  %v137_v26 = vmul.f32 %v105_v47, %v73_v61  ;;  %v138_v27 = vmul.f32 %v106_v13, %v74_v62  ;;  %v139_v33 = vmul.f32 %v107_v15, %v75_v63  ;;  %p511_p6 = pnand %p510_p5, %p504_p2 }
  0x3c   :  { %v110_v18 = vld [vmem:[#allocation6 + $0xf8] sm:$0xff]  ;;  %v140_v34 = vmul.f32 %v108_v16, %v76_v0  ;;  %v141_v31 = vmul.f32 %v109_v17, %v77_v8  ;;  %v733_v39 = vld [vmem:[#allocation12_spill] sm:$0xff]  ;;  %v735_v44 = vld [vmem:[#allocation14_spill] sm:$0xff] }
  0x3d   :  { %v142_v32 = vmul.f32 %v110_v18, %v78_v36  ;;  %v734_v41 = vld [vmem:[#allocation13_spill] sm:$0xff]  ;;  %v736_v49 = vld [vmem:[#allocation15_spill] sm:$0xff] }
  0xa7   :  { %v148_v35 = vpop.permute.xlu0 %147 }
  0xa8   :  { %v155_v40 = vmul.f32 %v148_v35, %v733_v39  ;;  %v156_v43 = vmul.f32 %v148_v35, %v734_v41  ;;  %v157_v48 = vmul.f32 %v148_v35, %v735_v44  ;;  %v158_v50 = vmul.f32 %v148_v35, %v736_v49 }
  0xa9   :  { %v159_v51 = vmul.f32 %v148_v35, %v115_v57  ;;  %v160_v52 = vmul.f32 %v148_v35, %v116_v58  ;;  %v161_v53 = vmul.f32 %v148_v35, %v117_v59  ;;  %v162_v54 = vmul.f32 %v148_v35, %v118_v60 }
  0xaa   :  { %v612_v36 = vmul.f32 %v148_v35, %v119_v4  ;;  %v614_v55 = vmul.f32 %v148_v35, %v120_v5  ;;  %v616_v56 = vmul.f32 %v148_v35, %v121_v6  ;;  %v618_v37 = vmul.f32 %v148_v35, %v122_v7 }
  0xab   :  { %v153_v45 = vpop.permute.xlu0 %152  ;;  %v620_v61 = vmul.f32 %v148_v35, %v123_v46  ;;  %v622_v62 = vmul.f32 %v148_v35, %v124_v10  ;;  %v624_v63 = vmul.f32 %v148_v35, %v125_v11  ;;  %v626_v0 = vmul.f32 %v148_v35, %v126_v12 }
  0xac   :  { %v171_v57 = vmul.f32 %v153_v45, %v127_v21  ;;  %v172_v58 = vmul.f32 %v153_v45, %v128_v22  ;;  %v173_v59 = vmul.f32 %v153_v45, %v129_v19  ;;  %v174_v60 = vmul.f32 %v153_v45, %v130_v20 }
  0xad   :  { %v175_v1 = vmul.f32 %v153_v45, %v131_v23  ;;  %v176_v2 = vmul.f32 %v153_v45, %v132_v28  ;;  %v177_v3 = vmul.f32 %v153_v45, %v133_v29  ;;  %v178_v4 = vmul.f32 %v153_v45, %v134_v30 }
  0xae   :  { %v628_v5 = vmul.f32 %v153_v45, %v135_v24  ;;  %v630_v6 = vmul.f32 %v153_v45, %v136_v25  ;;  %v632_v46 = vmul.f32 %v153_v45, %v137_v26  ;;  %v634_v7 = vmul.f32 %v153_v45, %v138_v27 }
  0xaf   :  { %v636_v8 = vmul.f32 %v153_v45, %v139_v33  ;;  %v638_v9 = vmul.f32 %v153_v45, %v140_v34  ;;  %v640_v14 = vmul.f32 %v153_v45, %v141_v31  ;;  %v642_v47 = vmul.f32 %v153_v45, %v142_v32 }
  0xb0   :  { %v187_v10 = vadd.f32 %v171_v57, %v155_v40  ;;  %v194_v11 = vadd.f32 %v172_v58, %v156_v43  ;;  %v201_v12 = vadd.f32 %v173_v59, %v157_v48  ;;  %v208_v13 = vadd.f32 %v174_v60, %v158_v50 }
  0xb1   :  { %v215_v15 = vadd.f32 %v175_v1, %v159_v51  ;;  %v222_v16 = vadd.f32 %v176_v2, %v160_v52  ;;  %v229_v21 = vadd.f32 %v177_v3, %v161_v53  ;;  %v236_v22 = vadd.f32 %v178_v4, %v162_v54 }
  0xb2   :  { %v188_v17 = vrot.slane %v187_v10, 4  ;;  %v195_v18 = vrot.slane %v194_v11, 4  ;;  %v202_v19 = vrot.slane %v201_v12, 4  ;;  %v209_v20 = vrot.slane %v208_v13, 4 }
  0xb3   :  { %v216_v23 = vrot.slane %v215_v15, 4  ;;  %v223_v28 = vrot.slane %v222_v16, 4  ;;  %v230_v29 = vrot.slane %v229_v21, 4  ;;  %v237_v30 = vrot.slane %v236_v22, 4 }
  0xb4   :  { %v189_v24 = vadd.f32 %v188_v17, %v187_v10  ;;  %v196_v25 = vadd.f32 %v195_v18, %v194_v11  ;;  %v203_v26 = vadd.f32 %v202_v19, %v201_v12  ;;  %v210_v27 = vadd.f32 %v209_v20, %v208_v13 }
  0xb5   :  { %v217_v33 = vadd.f32 %v216_v23, %v215_v15  ;;  %v224_v34 = vadd.f32 %v223_v28, %v222_v16  ;;  %v231_v35 = vadd.f32 %v230_v29, %v229_v21  ;;  %v238_v31 = vadd.f32 %v237_v30, %v236_v22 }
  0xb6   :  { %v190_v32 = vrot.slane %v189_v24, 2  ;;  %v197_v39 = vrot.slane %v196_v25, 2  ;;  %v204_v40 = vrot.slane %v203_v26, 2  ;;  %v211_v41 = vrot.slane %v210_v27, 2 }
  0xb7   :  { %v218_v43 = vrot.slane %v217_v33, 2  ;;  %v225_v44 = vrot.slane %v224_v34, 2  ;;  %v232_v48 = vrot.slane %v231_v35, 2  ;;  %v239_v49 = vrot.slane %v238_v31, 2 }
  0xb8   :  { %v191_v50 = vadd.f32 %v190_v32, %v189_v24  ;;  %v198_v51 = vadd.f32 %v197_v39, %v196_v25  ;;  %v205_v52 = vadd.f32 %v204_v40, %v203_v26  ;;  %v212_v53 = vadd.f32 %v211_v41, %v210_v27 }
  0xb9   :  { %v219_v54 = vadd.f32 %v218_v43, %v217_v33  ;;  %v226_v45 = vadd.f32 %v225_v44, %v224_v34  ;;  %v233_v57 = vadd.f32 %v232_v48, %v231_v35  ;;  %v240_v58 = vadd.f32 %v239_v49, %v238_v31 }
  0xba   :  { %v192_v59 = vrot.slane %v191_v50, 1  ;;  %v199_v60 = vrot.slane %v198_v51, 1  ;;  %v206_v1 = vrot.slane %v205_v52, 1  ;;  %v213_v2 = vrot.slane %v212_v53, 1 }
  0xbb   :  { %v220_v3 = vrot.slane %v219_v54, 1  ;;  %v227_v4 = vrot.slane %v226_v45, 1  ;;  %v234_v10 = vrot.slane %v233_v57, 1  ;;  %v241_v11 = vrot.slane %v240_v58, 1 }
  0xbc   :  { %v644_v12 = vadd.f32 %v192_v59, %v191_v50  ;;  %v646_v13 = vadd.f32 %v199_v60, %v198_v51  ;;  %v648_v15 = vadd.f32 %v206_v1, %v205_v52  ;;  %v650_v16 = vadd.f32 %v213_v2, %v212_v53 }
  0xbd   :  { %v652_v21 = vadd.f32 %v220_v3, %v219_v54  ;;  %v654_v22 = vadd.f32 %v227_v4, %v226_v45  ;;  %v656_v17 = vadd.f32 %v234_v10, %v233_v57  ;;  %v658_v18 = vadd.f32 %v241_v11, %v240_v58 }
  0xbe   :  { %v243_v19 = vadd.f32 %v628_v5, %v612_v36  ;;  %v250_v20 = vadd.f32 %v630_v6, %v614_v55  ;;  %v257_v23 = vadd.f32 %v632_v46, %v616_v56  ;;  %v264_v28 = vadd.f32 %v634_v7, %v618_v37 }
  0xbf   :  { %v271_v29 = vadd.f32 %v636_v8, %v620_v61  ;;  %v278_v30 = vadd.f32 %v638_v9, %v622_v62  ;;  %v285_v24 = vadd.f32 %v640_v14, %v624_v63  ;;  %v292_v36 = vadd.f32 %v642_v47, %v626_v0 }
  0xc0   :  { %v244_v5 = vrot.slane %v243_v19, 4  ;;  %v251_v55 = vrot.slane %v250_v20, 4  ;;  %v258_v6 = vrot.slane %v257_v23, 4  ;;  %v265_v25 = vrot.slane %v264_v28, 4 }
  0xc1   :  { %v272_v56 = vrot.slane %v271_v29, 4  ;;  %v279_v46 = vrot.slane %v278_v30, 4  ;;  %v286_v26 = vrot.slane %v285_v24, 4  ;;  %v293_v37 = vrot.slane %v292_v36, 4 }
  0xc2   :  { %v245_v7 = vadd.f32 %v244_v5, %v243_v19  ;;  %v252_v27 = vadd.f32 %v251_v55, %v250_v20  ;;  %v259_v61 = vadd.f32 %v258_v6, %v257_v23  ;;  %v266_v8 = vadd.f32 %v265_v25, %v264_v28 }
  0xc3   :  { %v273_v33 = vadd.f32 %v272_v56, %v271_v29  ;;  %v280_v62 = vadd.f32 %v279_v46, %v278_v30  ;;  %v287_v9 = vadd.f32 %v286_v26, %v285_v24  ;;  %v294_v34 = vadd.f32 %v293_v37, %v292_v36 }
  0xc4   :  { %v246_v63 = vrot.slane %v245_v7, 2  ;;  %v253_v14 = vrot.slane %v252_v27, 2  ;;  %v260_v35 = vrot.slane %v259_v61, 2  ;;  %v267_v0 = vrot.slane %v266_v8, 2 }
  0xc5   :  { %v274_v47 = vrot.slane %v273_v33, 2  ;;  %v281_v31 = vrot.slane %v280_v62, 2  ;;  %v288_v32 = vrot.slane %v287_v9, 2  ;;  %v295_v39 = vrot.slane %v294_v34, 2 }
  0xc6   :  { %v247_v40 = vadd.f32 %v246_v63, %v245_v7  ;;  %v254_v41 = vadd.f32 %v253_v14, %v252_v27  ;;  %v261_v43 = vadd.f32 %v260_v35, %v259_v61  ;;  %v268_v44 = vadd.f32 %v267_v0, %v266_v8 }
  0xc7   :  { %v275_v48 = vadd.f32 %v274_v47, %v273_v33  ;;  %v282_v49 = vadd.f32 %v281_v31, %v280_v62  ;;  %v289_v50 = vadd.f32 %v288_v32, %v287_v9  ;;  %v296_v51 = vadd.f32 %v295_v39, %v294_v34 }
  0xc8   :  { %v248_v52 = vrot.slane %v247_v40, 1  ;;  %v255_v53 = vrot.slane %v254_v41, 1  ;;  %v262_v54 = vrot.slane %v261_v43, 1  ;;  %v269_v45 = vrot.slane %v268_v44, 1 }
  0xc9   :  { %v276_v57 = vrot.slane %v275_v48, 1  ;;  %v283_v58 = vrot.slane %v282_v49, 1  ;;  %v290_v59 = vrot.slane %v289_v50, 1  ;;  %v297_v60 = vrot.slane %v296_v51, 1 }
  0xca   :  { %v249_v1 = vadd.f32 %v248_v52, %v247_v40  ;;  %v256_v2 = vadd.f32 %v255_v53, %v254_v41  ;;  %v263_v3 = vadd.f32 %v262_v54, %v261_v43  ;;  %v270_v4 = vadd.f32 %v269_v45, %v268_v44 }
  0xcb   :  { %v277_v10 = vadd.f32 %v276_v57, %v275_v48  ;;  %v284_v11 = vadd.f32 %v283_v58, %v282_v49  ;;  %v291_v19 = vadd.f32 %v290_v59, %v289_v50  ;;  %v298_v20 = vadd.f32 %v297_v60, %v296_v51 }
  0xcc   :  { %v301_v23 = vadd.f32 %v604_v42, %v644_v12  ;;  %v302_v28 = vadd.f32 %v604_v42, %v646_v13  ;;  %v303_v29 = vadd.f32 %v604_v42, %v648_v15  ;;  %v304_v30 = vadd.f32 %v604_v42, %v650_v16 }
  0xcd   :  { %v305_v24 = vadd.f32 %v604_v42, %v652_v21  ;;  %v306_v36 = vadd.f32 %v604_v42, %v654_v22  ;;  %v307_v5 = vadd.f32 %v604_v42, %v656_v17  ;;  %v308_v12 = vadd.f32 %v604_v42, %v658_v18 }
  0xce   :  { %v309_v13 = vadd.f32 %v604_v42, %v249_v1  ;;  %v310_v55 = vadd.f32 %v604_v42, %v256_v2  ;;  %v311_v15 = vadd.f32 %v604_v42, %v263_v3  ;;  %v312_v16 = vadd.f32 %v604_v42, %v270_v4 }
  0xcf   :  { %v313_v6 = vadd.f32 %v604_v42, %v277_v10  ;;  %v314_v21 = vadd.f32 %v604_v42, %v284_v11  ;;  %v315_v22 = vadd.f32 %v604_v42, %v291_v19  ;;  %v316_v25 = vadd.f32 %v604_v42, %v298_v20 }
  0xd0   :  { %v333_v17 = vcombine.low %v301_v23, %v302_v28  ;;  %v334_v56 = vcombine.low %v303_v29, %v304_v30  ;;  %v335_v46 = vcombine.low %v305_v24, %v306_v36  ;;  %v336_v18 = vcombine.low %v307_v5, %v308_v12 }
  0xd1   :  { %v382_v26 = vcombine.low %v309_v13, %v310_v55  ;;  %v383_v37 = vcombine.low %v311_v15, %v312_v16  ;;  %v384_v7 = vcombine.low %v313_v6, %v314_v21  ;;  %v385_v27 = vcombine.low %v315_v22, %v316_v25 }
  0xd2   :  { %v343_v61 = vrot.slane %v333_v17, %v606_v38  ;;  %v350_v8 = vrot.slane %v334_v56, %v606_v38  ;;  %v357_v33 = vrot.slane %v335_v46, %v606_v38  ;;  %v364_v62 = vrot.slane %v336_v18, %v606_v38 }
  0xd3   :  { %v392_v9 = vrot.slane %v382_v26, %v606_v38  ;;  %v399_v42 = vrot.slane %v383_v37, %v606_v38  ;;  %v406_v34 = vrot.slane %v384_v7, %v606_v38  ;;  %v413_v63 = vrot.slane %v385_v27, %v606_v38 }
  0xd4   :  { %v365_v14 = vcombine.low %v343_v61, %v350_v8  ;;  %v366_v35 = vcombine.low %v357_v33, %v364_v62 }
  0xd5   :  { %v414_v0 = vcombine.low %v392_v9, %v399_v42  ;;  %v415_v47 = vcombine.low %v406_v34, %v413_v63 }
  0xd6   :  { %v373_v31 = vrot.slane %v365_v14, %v606_v38  ;;  %v380_v32 = vrot.slane %v366_v35, %v606_v38 }
  0xd7   :  { %v422_v39 = vrot.slane %v414_v0, %v606_v38  ;;  %v429_v40 = vrot.slane %v415_v47, %v606_v38 }
  0xd8   :  { %v381_v41 = vcombine.low %v373_v31, %v380_v32 }
  0xd9   :  { %v430_v43 = vcombine.low %v422_v39, %v429_v40 }
  0xda   :  { %433 = vst [vmem:[#allocation8] sm:$0xff] %v381_v41 }
  0xdb   :  { %434 = vst [vmem:[#allocation8 + $0x8] sm:$0xff] %v430_v43 }
  0xdc   :  { %514 = shalt.err (!%p511_p6)
}
  0xdd   :  { %s515_s22 = scalar_lea.hbm %s728_s4, 256 }
  0xde   :  { %p516_p7 = scmp.ne.s32.totalorder %s728_s4, %s515_s22  ;;  %p519_p8 = scmp.lt.u32.totalorder %s515_s22, %s728_s4 }
  0xe0   :  { %p521_p9 = pnand %p519_p8, %p516_p7 }
  0xe2   :  { %524 = shalt.err (!%p521_p9)
}
  0xe3   :  { %444 = dma.vmem_to_hbm [thread:$0]  %s442_s18, 256, %s728_s4, [#allocation5]  }
  0xe4   :  { %529 = dma.done.wait [#allocation5], 256  }
  0xe5   :  { %530 = vsyncadd [#allocation5], 4294967040 }
  0xe6   :  { %448 = vsyncpa [#allocation4], 1 }
  0xe7   :  { %449 = vsyncpa [#allocation7], 1 }
  0xe8   :  { %450 = vsyncpa [#allocation5], 1 }

</bundles_post_ra>
